<compile_context>
chip_gen: v7x
topology: tpu7x:2x2x1
jax: 0.10.0
libtpu: 0.0.40
codegen_flags: <defaults>
</compile_context>

<pallas_src>
import jax
import jax.numpy as jnp
from jax.experimental import pallas as pl
from jax.experimental.pallas import tpu as pltpu

FEAT = 1000        # base_model output features (torchvision MobileNet -> 1000)
FEAT_PAD = 1024    # padded to a multiple of 128 for clean MXU tiling
HID = 128          # classifier hidden width
OUT = 1            # single smile logit
LANE = 128
SUBLANE = 8

VMEM_BUDGET = 24 * 1024 * 1024   # planning budget for the streamed x slabs + scratch
VMEM_LIMIT = 32 * 1024 * 1024    # explicit scoped-VMEM limit (valid on v5e/v6e/v7x)


def _round_up(x, m):
    return ((x + m - 1) // m) * m


def _cdiv(a, b):
    return (a + b - 1) // b


def _plan_tiling(b8, c, hw):
    """Choose (channels-per-chunk, padded cpc, num_chunks, batch tile) under a VMEM budget.

    Each grid step streams a [TILE_B, CPC*HW] slab of x (double-buffered) and accumulates
    that chunk's contribution to the FEAT_PAD-wide feature projection in VMEM scratch.
    Chunks hold whole channels so each channel's mean finishes within one chunk (keeps the
    kernel fully static -- no dynamic lane indexing).
    """
    candidates = []
    for cpc in range(c, 0, -1):
        if c % cpc:
            continue
        n_chunks = c // cpc
        if n_chunks > 1 and (cpc * hw) % LANE != 0:
            continue   # chunked lane dim must stay 128-aligned; full-dim block always ok
        cpc_pad = _round_up(cpc, SUBLANE)
        # per-row bytes: double-buffered x slab + f32 feature accumulator + bf16/hidden temps
        row_bytes = 2 * _round_up(cpc * hw, LANE) * 4 + FEAT_PAD * 4 + FEAT_PAD * 2 + HID * 4
        # weight blocks (double-buffered by the default pipeline)
        w_bytes = 2 * (cpc_pad * FEAT_PAD * 2 + FEAT_PAD * HID * 2
                       + (FEAT_PAD + 2 * HID + LANE) * 4)
        tile_b = (VMEM_BUDGET - w_bytes) // row_bytes
        tile_b = min(tile_b, 512, b8)
        if b8 >= 2 * SUBLANE:
            # guarantee >= 2 batch-grid steps so both v7x TensorCores get work
            tile_b = min(tile_b, _round_up(_cdiv(b8, 2), SUBLANE))
        tile_b = max(SUBLANE, (tile_b // SUBLANE) * SUBLANE)
        candidates.append((cpc, cpc_pad, n_chunks, tile_b))
        if tile_b >= 256:
            return candidates[-1]           # big tile at the fewest chunks -> done
    # otherwise take the plan with the largest batch tile (ties -> fewest chunks)
    return max(candidates, key=lambda p: (p[3], p[0]))


def _make_kernel(cpc, cpc_pad, hw, tile_b):
    inv_hw = 1.0 / float(hw)

    def kernel(x_ref, wf_ref, bf_ref, w1_ref, b1_ref, w2_ref, b2_ref, o_ref, feat_acc):
        j = pl.program_id(1)

        @pl.when(j == 0)
        def _init():
            feat_acc[...] = jnp.zeros_like(feat_acc)

        # ---- frozen backbone stand-in: per-channel global average pool (lane-dense x) ----
        cols = []
        for cc in range(cpc):                              # static lane slices
            sl = x_ref[:, cc * hw:(cc + 1) * hw]
            cols.append(jnp.sum(sl, axis=-1, keepdims=True))
        if cpc_pad > cpc:
            cols.append(jnp.zeros((tile_b, cpc_pad - cpc), jnp.float32))
        pooled = jnp.concatenate(cols, axis=-1) * inv_hw   # [TILE_B, CPC_PAD] f32

        # partial Linear(C,1000) for this chunk's channels (bf16 MXU, f32 accumulation)
        feat_acc[...] += jnp.dot(pooled.astype(jnp.bfloat16), wf_ref[...],
                                 preferred_element_type=jnp.float32)

        # ---- classifier head, once all channel chunks have been accumulated ----
        @pl.when(j == pl.num_programs(1) - 1)
        def _head():
            feats = feat_acc[...] + bf_ref[...]            # [TILE_B, FEAT_PAD] f32
            # Linear(1000 -> 128): bf16 operands on the MXU, f32 accumulation.
            h = jnp.dot(feats.astype(jnp.bfloat16), w1_ref[...],
                        preferred_element_type=jnp.float32)
            h = jnp.maximum(h + b1_ref[...], 0.0)          # bias + ReLU in f32
            # Dropout(0.3): identity at inference (PyTorch eval semantics).
            # Linear(128 -> 1): contract against the hidden axis so the result is a
            # lane-dense [1, TILE_B] row (no masked column stores).
            z = jax.lax.dot_general(w2_ref[...], h, (((1,), (1,)), ((), ())),
                                    preferred_element_type=jnp.float32) + b2_ref[0, 0]
            o_ref[...] = jnp.broadcast_to(jax.nn.sigmoid(z), o_ref.shape)

    return kernel


@jax.jit
def smile_classifier_forward(x, prep):
    """x: [B, C, H, W] f32 (NCHW, like PyTorch) -> [B, 1] f32 smile probability."""
    B, C, H, W = x.shape
    HW = H * W

    # Lane-dense view of x (free, contiguous reshape); pad the batch only to a sublane
    # multiple (no copy at all when B % 8 == 0; never a full TILE_B-sized pad).
    x2 = x.reshape(B, C * HW)
    B8 = _round_up(B, SUBLANE)
    if B8 != B:
        x2 = jnp.pad(x2, ((0, B8 - B), (0, 0)))

    cpc, cpc_pad, n_chunks, tile_b = _plan_tiling(B8, C, HW)
    n_btiles = _cdiv(B8, tile_b)            # ragged last block handled by Pallas

    # Chunked layout of the backbone weight: [n_chunks * cpc_pad, FEAT_PAD] bf16 (tiny).
    wf_blocks = prep["wf"].reshape(n_chunks, cpc, FEAT_PAD)
    if cpc_pad > cpc:
        wf_blocks = jnp.pad(wf_blocks, ((0, 0), (0, cpc_pad - cpc), (0, 0)))
    wf_tiled = wf_blocks.reshape(n_chunks * cpc_pad, FEAT_PAD)

    kernel = _make_kernel(cpc, cpc_pad, HW, tile_b)

    out = pl.pallas_call(
        kernel,
        out_shape=jax.ShapeDtypeStruct((n_btiles * SUBLANE, tile_b), jnp.float32),
        grid_spec=pltpu.PrefetchScalarGridSpec(
            num_scalar_prefetch=0,
            grid=(n_btiles, n_chunks),
            in_specs=[
                # batch-tiled, channel-chunked, lane-dense input slab
                pl.BlockSpec((tile_b, cpc * HW), lambda i, j: (i, j)),
                # weights / biases: constant or chunk-indexed block indices
                pl.BlockSpec((cpc_pad, FEAT_PAD), lambda i, j: (j, 0)),   # wf (bf16)
                pl.BlockSpec((1, FEAT_PAD), lambda i, j: (0, 0)),         # bf
                pl.BlockSpec((FEAT_PAD, HID), lambda i, j: (0, 0)),       # W1 (bf16)
                pl.BlockSpec((1, HID), lambda i, j: (0, 0)),              # b1
                pl.BlockSpec((1, HID), lambda i, j: (0, 0)),              # w2 row
                pl.BlockSpec((1, 1), lambda i, j: (0, 0),
                             memory_space=pltpu.MemorySpace.SMEM),        # b2 scalar
            ],
            out_specs=pl.BlockSpec((SUBLANE, tile_b), lambda i, j: (i, 0)),
            scratch_shapes=[pltpu.VMEM((tile_b, FEAT_PAD), jnp.float32)],
        ),
        compiler_params=pltpu.CompilerParams(
            dimension_semantics=("parallel", "arbitrary"),   # batch tiles shard on v7x TCs
            vmem_limit_bytes=VMEM_LIMIT,
        ),
    )(x2, wf_tiled, prep["bf"], prep["w1"], prep["b1"], prep["w2"], prep["b2"])

    probs = out.reshape(n_btiles, SUBLANE, tile_b)[:, 0, :].reshape(-1)[:B]
    return probs.reshape(B, OUT)


def prepare_params(params):
    """One-time weight padding / bf16 casts, hoisted out of the per-call path."""
    wf = jnp.pad(params["wf"], ((0, 0), (0, FEAT_PAD - FEAT))).astype(jnp.bfloat16)
    bf = jnp.pad(params["bf"], (0, FEAT_PAD - FEAT)).reshape(1, FEAT_PAD).astype(jnp.float32)
    w1 = jnp.pad(params["w1"], ((0, FEAT_PAD - FEAT), (0, 0))).astype(jnp.bfloat16)
    b1 = params["b1"].reshape(1, HID).astype(jnp.float32)
    w2 = params["w2"].reshape(1, HID).astype(jnp.float32)
    b2 = params["b2"].reshape(1, 1).astype(jnp.float32)
    return {"wf": wf, "bf": bf, "w1": w1, "b1": b1, "w2": w2, "b2": b2}


def init_params(key, in_channels):
    k = jax.random.split(key, 5)
    return {
        # synthetic backbone stand-in (frozen / no_grad in the original module)
        "wf": jax.random.normal(k[0], (in_channels, FEAT), jnp.float32) * 0.05,
        "bf": jnp.zeros((FEAT,), jnp.float32),
        # classifier: nn.Linear(1000, 128)
        "w1": jax.random.normal(k[1], (FEAT, HID), jnp.float32) * 0.02,
        "b1": jax.random.normal(k[2], (1, HID), jnp.float32) * 0.02,
        # classifier: nn.Linear(128, 1)
        "w2": jax.random.normal(k[3], (HID, OUT), jnp.float32) * 0.1,
        "b2": jax.random.normal(k[4], (1, OUT), jnp.float32) * 0.1,
    }


if __name__ == "__main__":
    key = jax.random.PRNGKey(0)
    kx, kp = jax.random.split(key)

    B, C, H, W = 2, 4, 16, 16
    x = jax.random.normal(kx, (B, C, H, W), jnp.float32)
    params = init_params(kp, C)
    prep = prepare_params(params)        # one-time weight preprocessing (hoisted)

    out = smile_classifier_forward(x, prep)
    out = jax.block_until_ready(out)
    assert out.shape == (B, OUT), out.shape

    # Pure-JAX reference (full precision) for a sanity check.
    pooled = jnp.mean(x, axis=(2, 3))
    feats_ref = pooled @ params["wf"] + params["bf"]
    h_ref = jnp.maximum(feats_ref @ params["w1"] + params["b1"], 0.0)
    ref = jax.nn.sigmoid(h_ref @ params["w2"] + params["b2"])
    assert jnp.allclose(out, ref, atol=2e-3, rtol=2e-3), (out, ref)

    print("KERNEL_OK")
</pallas_src>

<mosaic_0001>
module attributes {stable_mosaic.version = 11 : i64} {
  func.func @kernel(%arg0: i32, %arg1: i32, %arg2: memref<8x1024xf32, #tpu.memory_space<vmem>>, %arg3: memref<8x1024xbf16, #tpu.memory_space<vmem>>, %arg4: memref<1x1024xf32, #tpu.memory_space<vmem>>, %arg5: memref<1024x128xbf16, #tpu.memory_space<vmem>>, %arg6: memref<1x128xf32, #tpu.memory_space<vmem>>, %arg7: memref<1x128xf32, #tpu.memory_space<vmem>>, %arg8: memref<1x1xf32, #tpu.memory_space<smem>>, %arg9: memref<8x8xf32, #tpu.memory_space<vmem>>, %arg10: memref<8x1024xf32, #tpu.memory_space<vmem>>) attributes {dimension_semantics = [#tpu.dimension_semantics<parallel>, #tpu.dimension_semantics<arbitrary>], iteration_bounds = array<i64: 1, 1>, scalar_prefetch = 0 : i64, scratch_operands = 1 : i64, tpu.core_type = #tpu.core_type<tc>, window_params = [{transform_indices = @transform_0, window_bounds = array<i64: 8, 1024>}, {transform_indices = @transform_1, window_bounds = array<i64: 8, 1024>}, {pipeline_mode = #tpu.pipeline_mode<synchronous>, transform_indices = @transform_2, window_bounds = array<i64: 1, 1024>}, {pipeline_mode = #tpu.pipeline_mode<synchronous>, transform_indices = @transform_3, window_bounds = array<i64: 1024, 128>}, {pipeline_mode = #tpu.pipeline_mode<synchronous>, transform_indices = @transform_4, window_bounds = array<i64: 1, 128>}, {pipeline_mode = #tpu.pipeline_mode<synchronous>, transform_indices = @transform_5, window_bounds = array<i64: 1, 128>}, {transform_indices = @transform_6, window_bounds = array<i64: 1, 1>}, {transform_indices = @transform_7, window_bounds = array<i64: 8, 8>}]} {
    %c0_i32 = arith.constant 0 : i32
    %0 = arith.cmpi eq, %arg1, %c0_i32 : i32
    %1 = arith.extui %0 : i1 to i32
    %c0_i32_0 = arith.constant 0 : i32
    %2 = arith.cmpi ne, %1, %c0_i32_0 : i32
    scf.if %2 {
      %cst_19 = arith.constant 0.000000e+00 : f32
      %28 = vector.broadcast %cst_19 : f32 to vector<8x1024xf32>
      %c0_20 = arith.constant 0 : index
      %c0_21 = arith.constant 0 : index
      %29 = vector.load %arg10[%c0_20, %c0_21] : memref<8x1024xf32, #tpu.memory_space<vmem>>, vector<8x1024xf32>
      tpu.vector_store %arg10[%c0_20, %c0_21], %28 {strides = array<i32>} : memref<8x1024xf32, #tpu.memory_space<vmem>>, vector<8x1024xf32>,
    } else {
    }
    %c0 = arith.constant 0 : index
    %c0_1 = arith.constant 0 : index
    %3 = vector.load %arg2[%c0, %c0_1] : memref<8x1024xf32, #tpu.memory_space<vmem>>, vector<8x256xf32>
    %cst = arith.constant dense<0.000000e+00> : vector<8xf32>
    %4 = vector.multi_reduction <add>, %3, %cst [1] : vector<8x256xf32> to vector<8xf32>
    %5 = vector.shape_cast %4 : vector<8xf32> to vector<8x1xf32>
    %c0_2 = arith.constant 0 : index
    %c256 = arith.constant 256 : index
    %6 = vector.load %arg2[%c0_2, %c256] : memref<8x1024xf32, #tpu.memory_space<vmem>>, vector<8x256xf32>
    %cst_3 = arith.constant dense<0.000000e+00> : vector<8xf32>
    %7 = vector.multi_reduction <add>, %6, %cst_3 [1] : vector<8x256xf32> to vector<8xf32>
    %8 = vector.shape_cast %7 : vector<8xf32> to vector<8x1xf32>
    %c0_4 = arith.constant 0 : index
    %c512 = arith.constant 512 : index
    %9 = vector.load %arg2[%c0_4, %c512] : memref<8x1024xf32, #tpu.memory_space<vmem>>, vector<8x256xf32>
    %cst_5 = arith.constant dense<0.000000e+00> : vector<8xf32>
    %10 = vector.multi_reduction <add>, %9, %cst_5 [1] : vector<8x256xf32> to vector<8xf32>
    %11 = vector.shape_cast %10 : vector<8xf32> to vector<8x1xf32>
    %c0_6 = arith.constant 0 : index
    %c768 = arith.constant 768 : index
    %12 = vector.load %arg2[%c0_6, %c768] : memref<8x1024xf32, #tpu.memory_space<vmem>>, vector<8x256xf32>
    %cst_7 = arith.constant dense<0.000000e+00> : vector<8xf32>
    %13 = vector.multi_reduction <add>, %12, %cst_7 [1] : vector<8x256xf32> to vector<8xf32>
    %14 = vector.shape_cast %13 : vector<8xf32> to vector<8x1xf32>
    %cst_8 = arith.constant 0.000000e+00 : f32
    %15 = vector.broadcast %cst_8 : f32 to vector<8x4xf32>
    %16 = tpu.concatenate %5, %8, %11, %14, %15 in 1 : vector<8x1xf32>, vector<8x1xf32>, vector<8x1xf32>, vector<8x1xf32>, vector<8x4xf32> -> vector<8x8xf32>
    %cst_9 = arith.constant 3.906250e-03 : f32
    %17 = vector.broadcast %cst_9 : f32 to vector<8x8xf32>
    %18 = arith.mulf %16, %17 : vector<8x8xf32>
    %c0_10 = arith.constant 0 : index
    %c0_11 = arith.constant 0 : index
    %19 = vector.load %arg10[%c0_10, %c0_11] : memref<8x1024xf32, #tpu.memory_space<vmem>>, vector<8x1024xf32>
    %20 = arith.truncf %18 : vector<8x8xf32> to vector<8x8xbf16>
    %c0_12 = arith.constant 0 : index
    %c0_13 = arith.constant 0 : index
    %21 = vector.load %arg3[%c0_12, %c0_13] : memref<8x1024xbf16, #tpu.memory_space<vmem>>, vector<8x1024xbf16>
    %cst_14 = arith.constant dense<0.000000e+00> : vector<8x1024xf32>
    %22 = tpu.matmul %20, %21, %cst_14 {dimension_numbers = #tpu.dot_dimension_numbers<[1], [0], [0], [1], [0, 0, 1, 1], [], []>} : vector<8x8xbf16>, vector<8x1024xbf16>, vector<8x1024xf32> -> vector<8x1024xf32>
    %23 = arith.addf %19, %22 : vector<8x1024xf32>
    %c0_15 = arith.constant 0 : index
    %c0_16 = arith.constant 0 : index
    %24 = vector.load %arg10[%c0_15, %c0_16] : memref<8x1024xf32, #tpu.memory_space<vmem>>, vector<8x1024xf32>
    tpu.vector_store %arg10[%c0_15, %c0_16], %23 {strides = array<i32>} : memref<8x1024xf32, #tpu.memory_space<vmem>>, vector<8x1024xf32>,
    %c0_i32_17 = arith.constant 0 : i32
    %25 = arith.cmpi eq, %arg1, %c0_i32_17 : i32
    %26 = arith.extui %25 : i1 to i32
    %c0_i32_18 = arith.constant 0 : i32
    %27 = arith.cmpi ne, %26, %c0_i32_18 : i32
    scf.if %27 {
      %c0_19 = arith.constant 0 : index
      %c0_20 = arith.constant 0 : index
      %28 = vector.load %arg10[%c0_19, %c0_20] : memref<8x1024xf32, #tpu.memory_space<vmem>>, vector<8x1024xf32>
      %c0_21 = arith.constant 0 : index
      %c0_22 = arith.constant 0 : index
      %29 = vector.load %arg4[%c0_21, %c0_22] : memref<1x1024xf32, #tpu.memory_space<vmem>>, vector<1x1024xf32>
      %30 = vector.broadcast %29 : vector<1x1024xf32> to vector<8x1024xf32>
      %31 = arith.addf %28, %30 : vector<8x1024xf32>
      %32 = arith.truncf %31 : vector<8x1024xf32> to vector<8x1024xbf16>
      %c0_23 = arith.constant 0 : index
      %c0_24 = arith.constant 0 : index
      %33 = vector.load %arg5[%c0_23, %c0_24] : memref<1024x128xbf16, #tpu.memory_space<vmem>>, vector<1024x128xbf16>
      %cst_25 = arith.constant dense<0.000000e+00> : vector<8x128xf32>
      %34 = tpu.matmul %32, %33, %cst_25 {dimension_numbers = #tpu.dot_dimension_numbers<[1], [0], [0], [1], [0, 0, 1, 1], [], []>} : vector<8x1024xbf16>, vector<1024x128xbf16>, vector<8x128xf32> -> vector<8x128xf32>
      %c0_26 = arith.constant 0 : index
      %c0_27 = arith.constant 0 : index
      %35 = vector.load %arg6[%c0_26, %c0_27] : memref<1x128xf32, #tpu.memory_space<vmem>>, vector<1x128xf32>
      %36 = vector.broadcast %35 : vector<1x128xf32> to vector<8x128xf32>
      %37 = arith.addf %34, %36 : vector<8x128xf32>
      %cst_28 = arith.constant 0.000000e+00 : f32
      %38 = vector.broadcast %cst_28 : f32 to vector<8x128xf32>
      %39 = arith.maximumf %37, %38 : vector<8x128xf32>
      %c0_29 = arith.constant 0 : index
      %c0_30 = arith.constant 0 : index
      %40 = vector.load %arg7[%c0_29, %c0_30] : memref<1x128xf32, #tpu.memory_space<vmem>>, vector<1x128xf32>
      %cst_31 = arith.constant dense<0.000000e+00> : vector<1x8xf32>
      %41 = tpu.matmul %40, %39, %cst_31 {dimension_numbers = #tpu.dot_dimension_numbers<[1], [1], [0], [0], [0, 0, 1, 0], [], []>} : vector<1x128xf32>, vector<8x128xf32>, vector<1x8xf32> -> vector<1x8xf32>
      %c0_32 = arith.constant 0 : index
      %c0_33 = arith.constant 0 : index
      %42 = memref.load %arg8[%c0_32, %c0_33] : memref<1x1xf32, #tpu.memory_space<smem>>
      %43 = vector.broadcast %42 : f32 to vector<1x8xf32>
      %44 = arith.addf %41, %43 : vector<1x8xf32>
      %45 = arith.negf %44 : vector<1x8xf32>
      %46 = math.exp %45 : vector<1x8xf32>
      %cst_34 = arith.constant 1.000000e+00 : f32
      %47 = vector.broadcast %cst_34 : f32 to vector<1x8xf32>
      %48 = arith.addf %47, %46 : vector<1x8xf32>
      %49 = arith.divf %47, %48 : vector<1x8xf32>
      %50 = vector.shape_cast %49 : vector<1x8xf32> to vector<1x8xf32>
      %51 = vector.broadcast %50 : vector<1x8xf32> to vector<8x8xf32>
      %c0_35 = arith.constant 0 : index
      %c0_36 = arith.constant 0 : index
      %52 = vector.load %arg9[%c0_35, %c0_36] : memref<8x8xf32, #tpu.memory_space<vmem>>, vector<8x8xf32>
      tpu.vector_store %arg9[%c0_35, %c0_36], %51 {strides = array<i32>} : memref<8x8xf32, #tpu.memory_space<vmem>>, vector<8x8xf32>,
    } else {
    }
    return
  }
  func.func @transform_0(%arg0: i32, %arg1: i32) -> (i32, i32) {
    %c0_i32 = arith.constant 0 : i32
    return %arg0, %arg1 : i32, i32
  }
  func.func @transform_1(%arg0: i32, %arg1: i32) -> (i32, i32) {
    %c0_i32 = arith.constant 0 : i32
    %c0_i32_0 = arith.constant 0 : i32
    return %arg1, %c0_i32 : i32, i32
  }
  func.func @transform_2(%arg0: i32, %arg1: i32) -> (i32, i32) {
    %c0_i32 = arith.constant 0 : i32
    %c0_i32_0 = arith.constant 0 : i32
    %c0_i32_1 = arith.constant 0 : i32
    return %c0_i32, %c0_i32_0 : i32, i32
  }
  func.func @transform_3(%arg0: i32, %arg1: i32) -> (i32, i32) {
    %c0_i32 = arith.constant 0 : i32
    %c0_i32_0 = arith.constant 0 : i32
    %c0_i32_1 = arith.constant 0 : i32
    return %c0_i32, %c0_i32_0 : i32, i32
  }
  func.func @transform_4(%arg0: i32, %arg1: i32) -> (i32, i32) {
    %c0_i32 = arith.constant 0 : i32
    %c0_i32_0 = arith.constant 0 : i32
    %c0_i32_1 = arith.constant 0 : i32
    return %c0_i32, %c0_i32_0 : i32, i32
  }
  func.func @transform_5(%arg0: i32, %arg1: i32) -> (i32, i32) {
    %c0_i32 = arith.constant 0 : i32
    %c0_i32_0 = arith.constant 0 : i32
    %c0_i32_1 = arith.constant 0 : i32
    return %c0_i32, %c0_i32_0 : i32, i32
  }
  func.func @transform_6(%arg0: i32, %arg1: i32) -> (i32, i32) {
    %c0_i32 = arith.constant 0 : i32
    %c0_i32_0 = arith.constant 0 : i32
    %c0_i32_1 = arith.constant 0 : i32
    return %c0_i32, %c0_i32_0 : i32, i32
  }
  func.func @transform_7(%arg0: i32, %arg1: i32) -> (i32, i32) {
    %c0_i32 = arith.constant 0 : i32
    %c0_i32_0 = arith.constant 0 : i32
    return %arg0, %c0_i32 : i32, i32
  }
}

</mosaic_0001>

<bundles_post_ra>
// kernel: smile_classifier_forward.1
= control target key start
LH: loop header
LB: loop body
LE: loop exit
PB: predicated region body
PF: predicated region fallthrough
CT: control target
= control target key end

     0   :  { %13 = vsyncpa [#allocation5], 0  ;;  %s1446_s24 = smov [#allocation4]   ;;  %s1598_s0 = inlined_call_operand.vmem [shape: f32[8,1024], index: 0, kind: input, shape index: {}]   ;;  %s1599_s1 = inlined_call_operand.vmem [shape: bf16[8,1024], index: 1, kind: input, shape index: {}]   ;;  %s1600_s2 = inlined_call_operand.vmem [shape: f32[1,1024], index: 2, kind: input, shape index: {}]   ;;  %s1601_s3 = inlined_call_operand.hbm [shape: bf16[1024,128], index: 3, kind: input, shape index: {}]   ;;  %s1602_s4 = inlined_call_operand.vmem [shape: f32[1,128], index: 4, kind: input, shape index: {}]   ;;  %s1603_s5 = inlined_call_operand.vmem [shape: f32[1,128], index: 5, kind: input, shape index: {}]   ;;  %s1604_s6 = inlined_call_operand.<no memory space> [shape: f32[1,1], index: 6, kind: input, shape index: {}]   ;;  %s1605_s7 = inlined_call_operand.vmem [shape: f32[8,8], index: 7, kind: output, shape index: {}]  }
   0x1   :  { %s25_s25 = sshll.u32 %s1446_s24, 4  ;;  %s1422_s28 = scalar_lea.hbm %s1601_s3, 8192  ;;  %s26_s25 = int_to_ptr.vmem [resolvable:$true] %s25_s25 }
   0x2   :  { %p1423_p0 = scmp.ne.s32.totalorder %s1601_s3, %s1422_s28  ;;  %p1426_p1 = scmp.lt.u32.totalorder %s1422_s28, %s1601_s3 }
   0x4   :  { %p1428_p2 = pnand %p1426_p1, %p1423_p0 }
   0x6   :  { %1431 = shalt.err (!%p1428_p2)
}
   0x7   :  { %s1432_s10 = scalar_lea.vmem %s26_s25, 8192  ;;  %p1437_p4 = scmp.lt.s32.totalorder %s26_s25, %s26_s25 }
   0x8   :  { %p1433_p3 = scmp.ne.s32.totalorder %s26_s25, %s1432_s10  ;;  %p1438_p5 = scmp.lt.s32.totalorder %s1432_s10, %s1432_s10 }
   0xa   :  { %p1439_p6 = por %p1438_p5, %p1437_p4 }
   0xc   :  { %p1440_p7 = pnand %p1439_p6, %p1433_p3 }
   0xe   :  { %1443 = shalt.err (!%p1440_p7)
}
   0xf   :  { %s1447_s11 = smov 64   ;;  %s1448_s12 = smov 4  }
  0x10   :  { %31 = dma.hbm_to_vmem [thread:$0]  %s1601_s3, 8192, %s26_s25, [#allocation5], %s1447_s11, %s1447_s11, %s1448_s12  }
  0x11   :  { %1444 = dma.done.wait [#allocation5], 8192  }
  0x12   :  { %1445 = vsyncadd [#allocation5], 4294959104  ;;  %v54_v0 = vld [vmem:[%s1598_s0] sm:$0xff]  ;;  %v55_v1 = vld [vmem:[%s1598_s0 + $0x8] sm:$0xff]  ;;  %vm120_vm0 = vcmask 1043456   ;;  %v1449_v20 = vmov 0  }
  0x13   :  { %v64_v2 = vld [vmem:[%s1598_s0 + $0x20] sm:$0xff]  ;;  %v56_v3 = vadd.f32 %v55_v1, %v54_v0  ;;  %v65_v4 = vld [vmem:[%s1598_s0 + $0x28] sm:$0xff]  ;;  %v59_v5 = vld [vmem:[%s1598_s0 + $0x10] sm:$0xff]  ;;  %177 = vmatprep.mubr.bf16.mxu0 %v1449_v20  ;;  %218 = vmatprep.mubr.bf16.mxu1 %v1449_v20  ;;  %vm74_vm1 = vcmask 7168   ;;  %vm76_vm2 = vcmask 15360   ;;  %vm78_vm3 = vcmask 23552  }
  0x14   :  { %v60_v6 = vld [vmem:[%s1598_s0 + $0x18] sm:$0xff]  ;;  %v66_v7 = vadd.f32 %v65_v4, %v64_v2  ;;  %v69_v8 = vld [vmem:[%s1598_s0 + $0x30] sm:$0xff]  ;;  %v92_v12 = vld [vmem:[%s1599_s1] sm:$0xff]  ;;  %vm80_vm4 = vcmask 31744   ;;  %vm116_vm5 = vcmask 64512   ;;  %vm1451_vm6 = vmmov 0  }
  0x15   :  { %v70_v9 = vld [vmem:[%s1598_s0 + $0x38] sm:$0xff]  ;;  %57 = vadd.xlane.f32.xlu0 %v56_v3  ;;  %v61_v10 = vadd.f32 %v60_v6, %v59_v5  ;;  %v93_v13 = vld [vmem:[%s1599_s1 + $0x8] sm:$0xff]  ;;  %v1164_v14 = vcombine.high %v92_v12, %v92_v12  ;;  %v1163_v16 = vcombine.low %v92_v12, %v92_v12  ;;  %v94_v21 = vld [vmem:[%s1599_s1 + $0x10] sm:$0xff] }
  0x16   :  { %67 = vadd.xlane.f32.xlu1 %v66_v7  ;;  %v71_v11 = vadd.f32 %v70_v9, %v69_v8  ;;  %v1166_v15 = vcombine.high %v93_v13, %v93_v13  ;;  %v1165_v17 = vcombine.low %v93_v13, %v93_v13  ;;  %v95_v22 = vld [vmem:[%s1599_s1 + $0x18] sm:$0xff]  ;;  %v1168_v23 = vcombine.high %v94_v21, %v94_v21  ;;  %v1354_v39 = vld [vmem:[#allocation4 + $0x40] sm:$0xff]   ;;  %v1358_v43 = vld [vmem:[#allocation4 + $0x48] sm:$0xff]  }
  0x17   :  { %1171 = vmatprep.subr.msk.bf16.mxu0 %vm120_vm0, %v1164_v14  ;;  %v122_v18 = vsel %vm120_vm0, %v1163_v16, 0  ;;  %v1170_v24 = vcombine.high %v95_v22, %v95_v22  ;;  %v1167_v25 = vcombine.low %v94_v21, %v94_v21  ;;  %v1169_v26 = vcombine.low %v95_v22, %v95_v22  ;;  %v1355_v40 = vld [vmem:[#allocation4 + $0xc0] sm:$0xff]   ;;  %v1359_v44 = vld [vmem:[#allocation4 + $0xc8] sm:$0xff]   ;;  %v1362_v47 = vld [vmem:[#allocation4 + $0x50] sm:$0xff]  }
  0x18   :  { %1173 = vmatprep.subr.msk.bf16.mxu1 %vm120_vm0, %v1166_v15  ;;  %v128_v19 = vsel %vm120_vm0, %v1165_v17, 0  ;;  %146 = vmatpush1.bf16.msra.mxu0 %v122_v18  ;;  %v1356_v41 = vld [vmem:[#allocation4] sm:$0xff]   ;;  %v1360_v45 = vld [vmem:[#allocation4 + $0x8] sm:$0xff]   ;;  %v1363_v48 = vld [vmem:[#allocation4 + $0xd0] sm:$0xff]   ;;  %v338_v9 = vlaneseq }
  0x19   :  { %62 = vadd.xlane.f32.xlu0 %v61_v10  ;;  %187 = vmatpush1.bf16.msra.mxu1 %v128_v19  ;;  %v134_v27 = vsel %vm120_vm0, %v1167_v25, 0  ;;  %v140_v28 = vsel %vm120_vm0, %v1169_v26, 0  ;;  %v1357_v42 = vld [vmem:[#allocation4 + $0x80] sm:$0xff]   ;;  %v1361_v46 = vld [vmem:[#allocation4 + $0x88] sm:$0xff]   ;;  %v1364_v49 = vld [vmem:[#allocation4 + $0x10] sm:$0xff]  }
  0x1a   :  { %72 = vadd.xlane.f32.xlu1 %v71_v11  ;;  %1175 = vmatprep.subr.msk.bf16.mxu0 %vm120_vm0, %v1168_v23  ;;  %v1365_v50 = vld [vmem:[#allocation4 + $0x90] sm:$0xff]   ;;  %v1366_v51 = vld [vmem:[#allocation4 + $0x58] sm:$0xff]   ;;  %v1370_v55 = vld [vmem:[#allocation4 + $0x60] sm:$0xff]   ;;  %v1552_v10 = vshrl.u32 %v338_v9, 7 }
  0x1b   :  { %1177 = vmatprep.subr.msk.bf16.mxu1 %vm120_vm0, %v1170_v24  ;;  %v1367_v52 = vld [vmem:[#allocation4 + $0xd8] sm:$0xff]   ;;  %v1371_v56 = vld [vmem:[#allocation4 + $0xe0] sm:$0xff]   ;;  %v1374_v59 = vld [vmem:[#allocation4 + $0x68] sm:$0xff]  }
  0x1c   :  { %v1368_v53 = vld [vmem:[#allocation4 + $0x18] sm:$0xff]   ;;  %v1372_v57 = vld [vmem:[#allocation4 + $0x20] sm:$0xff]   ;;  %v1375_v60 = vld [vmem:[#allocation4 + $0xe8] sm:$0xff]   ;;  %v340_v11 = vsub.s32 0, %v1552_v10  ;;  %v348_v12 = vsub.s32 2, %v1552_v10  ;;  %v344_v14 = vsub.s32 1, %v1552_v10 }
  0x1d   :  { %v1369_v54 = vld [vmem:[#allocation4 + $0x98] sm:$0xff]   ;;  %v1373_v58 = vld [vmem:[#allocation4 + $0xa0] sm:$0xff]   ;;  %v1376_v61 = vld [vmem:[#allocation4 + $0x28] sm:$0xff]   ;;  %v352_v15 = vsub.s32 3, %v1552_v10 }
  0x1e   :  { %v1377_v62 = vld [vmem:[#allocation4 + $0xa8] sm:$0xff]   ;;  %v1378_v63 = vld [vmem:[#allocation4 + $0x70] sm:$0xff]   ;;  %v1382_v3 = vld [vmem:[#allocation4 + $0x78] sm:$0xff]  }
  0x1f   :  { %v1379_v0 = vld [vmem:[#allocation4 + $0xf0] sm:$0xff]   ;;  %v1383_v4 = vld [vmem:[#allocation4 + $0xf8] sm:$0xff]   ;;  %v1386_v7 = vld [vmem:[#allocation4 + $0x140] sm:$0xff]  }
  0x20   :  { %v1380_v1 = vld [vmem:[#allocation4 + $0x30] sm:$0xff]   ;;  %v1384_v5 = vld [vmem:[#allocation4 + $0x38] sm:$0xff]   ;;  %v1387_v8 = vld [vmem:[#allocation4 + $0x1c0] sm:$0xff]  }
  0x21   :  { %v1381_v2 = vld [vmem:[#allocation4 + $0xb0] sm:$0xff]   ;;  %v1385_v6 = vld [vmem:[#allocation4 + $0xb8] sm:$0xff]   ;;  %v1559_v13 = vld [vmem:[%s1600_s2] sm:$0xff] }
  0x22   :  { %v341_v16 = vrot.slane %v1559_v13, %v340_v11  ;;  %v349_v17 = vrot.slane %v1559_v13, %v348_v12  ;;  %v345_v18 = vrot.slane %v1559_v13, %v344_v14  ;;  %v353_v19 = vrot.slane %v1559_v13, %v352_v15  ;;  %v1409_v9 = vld [vmem:[#allocation4 + $0x1a8] sm:$0xff]   ;;  %v1410_v15 = vld [vmem:[#allocation4 + $0x170] sm:$0xff]  }
  0x23   :  { %v356_v12 = vsub.s32 4, %v1552_v10  ;;  %v364_v14 = vsub.s32 6, %v1552_v10 }
  0xa2   :  { %v58_v29 = vpop.xlane.xlu0 %57 }
  0xa3   :  { %v68_v30 = vpop.xlane.xlu1 %67 }
  0xa6   :  { %v63_v31 = vpop.xlane.xlu0 %62 }
  0xa7   :  { %v75_v32 = vsel %vm74_vm1, %v58_v29, %v63_v31  ;;  %v73_v33 = vpop.xlane.xlu1 %72  ;;  %v368_v31 = vsub.s32 7, %v1552_v10 }
  0xa8   :  { %v77_v34 = vsel %vm76_vm2, %v75_v32, %v68_v30  ;;  %v360_v30 = vsub.s32 5, %v1552_v10 }
  0xa9   :  { %v79_v35 = vsel %vm78_vm3, %v77_v34, %v73_v33 }
  0xaa   :  { %v81_v36 = vsel %vm80_vm4, %v79_v35, 0.0 }
  0xab   :  { %v82_v37 = vmul.f32 0.00390625, %v81_v36  ;;  %v1388_v36 = vld [vmem:[#allocation4 + $0x100] sm:$0xff]  }
  0xad   :  { %v91_v38 = vpack.c.bf16 %v82_v37, %v82_v37  ;;  %v1389_v37 = vld [vmem:[#allocation4 + $0x180] sm:$0xff]  }
  0xaf   :  { %1172 = vmatmul.mubr.msk.bf16.vlgmr.msra.gmra.mrb[0].mxu0 %vm116_vm5, %v91_v38  ;;  %1174 = vmatmul.mubr.msk.bf16.vlgmr.msra.gmra.mrb[0].mxu1 %vm116_vm5, %v91_v38 }
  0xb0   :  { %228 = vmatpush1.bf16.msra.mxu0 %v134_v27  ;;  %269 = vmatpush1.bf16.msra.mxu1 %v140_v28 }
  0xb1   :  { %259 = vmatprep.mubr.bf16.mxu0 %v1449_v20  ;;  %300 = vmatprep.mubr.bf16.mxu1 %v1449_v20 }
  0xb2   :  { %1245 = vmatprep.subr.bf16.mxu0 %v1354_v39  ;;  %1267 = vmatprep.subr.bf16.mxu1 %v1355_v40  ;;  %v1390_v40 = vld [vmem:[#allocation4 + $0x148] sm:$0xff]  }
  0xb7   :  { %1176 = vmatmul.mubr.msk.bf16.vlgmr.msra.gmra.mrb[4].mxu0 %vm116_vm5, %v91_v38  ;;  %1178 = vmatmul.mubr.msk.bf16.vlgmr.msra.gmra.mrb[4].mxu1 %vm116_vm5, %v91_v38 }
  0xb8   :  { %1246 = vmatpush3.bf16.msra.mxu0 %v1356_v41  ;;  %1268 = vmatpush3.bf16.msra.mxu1 %v1357_v42  ;;  %v1391_v41 = vld [vmem:[#allocation4 + $0x1c8] sm:$0xff]   ;;  %v361_v42 = vrot.slane %v1559_v13, %v360_v30 }
  0xb9   :  { %1247 = vmatprep.subr.bf16.mxu0 %v1358_v43  ;;  %1269 = vmatprep.subr.bf16.mxu1 %v1359_v44  ;;  %v369_v43 = vrot.slane %v1559_v13, %v368_v31  ;;  %v1179_v31 = vld [vmem:[%s1602_s4] ss:$0 sm:$0xff] }
  0xbc   :  { %1248 = vmatpush3.bf16.msra.mxu0 %v1360_v45  ;;  %1270 = vmatpush3.bf16.msra.mxu1 %v1361_v46  ;;  %v1392_v46 = vld [vmem:[#allocation4 + $0x108] sm:$0xff]  }
  0xbd   :  { %1249 = vmatprep.subr.bf16.mxu0 %v1362_v47  ;;  %1271 = vmatprep.subr.bf16.mxu1 %v1363_v48  ;;  %v1393_v47 = vld [vmem:[#allocation4 + $0x188] sm:$0xff]  }
  0xc0   :  { %1250 = vmatpush3.bf16.msra.mxu0 %v1364_v49  ;;  %1272 = vmatpush3.bf16.msra.mxu1 %v1365_v50  ;;  %v1394_v50 = vld [vmem:[#allocation4 + $0x150] sm:$0xff]  }
  0xc1   :  { %1251 = vmatprep.subr.bf16.mxu0 %v1366_v51  ;;  %1273 = vmatprep.subr.bf16.mxu1 %v1367_v52  ;;  %v1395_v51 = vld [vmem:[#allocation4 + $0x1d0] sm:$0xff]  }
  0xc4   :  { %1252 = vmatpush3.bf16.msra.mxu0 %v1368_v53  ;;  %1274 = vmatpush3.bf16.msra.mxu1 %v1369_v54 }
  0xc5   :  { %1253 = vmatprep.subr.bf16.mxu0 %v1370_v55  ;;  %1275 = vmatprep.subr.bf16.mxu1 %v1371_v56 }
  0xc8   :  { %1254 = vmatpush3.bf16.msra.mxu0 %v1372_v57  ;;  %1276 = vmatpush3.bf16.msra.mxu1 %v1373_v58 }
  0xc9   :  { %1255 = vmatprep.subr.bf16.mxu0 %v1374_v59  ;;  %1277 = vmatprep.subr.bf16.mxu1 %v1375_v60  ;;  %v1396_v60 = vld [vmem:[#allocation4 + $0x110] sm:$0xff]  }
  0xcc   :  { %1256 = vmatpush3.bf16.msra.mxu0 %v1376_v61  ;;  %1278 = vmatpush3.bf16.msra.mxu1 %v1377_v62  ;;  %v1397_v61 = vld [vmem:[#allocation4 + $0x190] sm:$0xff]   ;;  %v1398_v62 = vld [vmem:[#allocation4 + $0x158] sm:$0xff]  }
  0xcd   :  { %1257 = vmatprep.subr.bf16.mxu0 %v1378_v63  ;;  %1279 = vmatprep.subr.bf16.mxu1 %v1379_v0  ;;  %v1399_v63 = vld [vmem:[#allocation4 + $0x1d8] sm:$0xff]  }
  0xce   :  { %v1400_v0 = vld [vmem:[#allocation4 + $0x118] sm:$0xff]  }
  0xd0   :  { %1258 = vmatpush3.bf16.msra.mxu0 %v1380_v1  ;;  %1280 = vmatpush3.bf16.msra.mxu1 %v1381_v2  ;;  %v1401_v1 = vld [vmem:[#allocation4 + $0x198] sm:$0xff]   ;;  %v1402_v2 = vld [vmem:[#allocation4 + $0x160] sm:$0xff]  }
  0xd1   :  { %1259 = vmatprep.subr.bf16.mxu0 %v1382_v3  ;;  %1281 = vmatprep.subr.bf16.mxu1 %v1383_v4  ;;  %v1403_v3 = vld [vmem:[#allocation4 + $0x1e0] sm:$0xff]  }
  0xd2   :  { %v1404_v4 = vld [vmem:[#allocation4 + $0x120] sm:$0xff]  }
  0xd4   :  { %1260 = vmatpush3.bf16.msra.mxu0 %v1384_v5  ;;  %1282 = vmatpush3.bf16.msra.mxu1 %v1385_v6  ;;  %v1405_v5 = vld [vmem:[#allocation4 + $0x1a0] sm:$0xff]   ;;  %v1406_v6 = vld [vmem:[#allocation4 + $0x168] sm:$0xff]  }
  0xd5   :  { %1289 = vmatprep.subr.bf16.mxu0 %v1386_v7  ;;  %1311 = vmatprep.subr.bf16.mxu1 %v1387_v8  ;;  %v1407_v7 = vld [vmem:[#allocation4 + $0x1e8] sm:$0xff]  }
  0xd6   :  { %v1408_v8 = vld [vmem:[#allocation4 + $0x128] sm:$0xff]  }
 0x182   :  { %v179_v20 = vpop.f32.mrb[0].mxu0  ;;  %v220_v21 = vpop.f32.mrb[0].mxu1 }
 0x183   :  { %v378_v22 = vadd.f32 %v341_v16, %v179_v20  ;;  %v380_v23 = vadd.f32 %v349_v17, %v220_v21  ;;  %v181_v24 = vpop.f32.mrb[1].mxu0  ;;  %v222_v25 = vpop.f32.mrb[1].mxu1  ;;  %v1411_v16 = vld [vmem:[#allocation4 + $0x1f0] sm:$0xff]   ;;  %v365_v20 = vrot.slane %v1559_v13, %v364_v14  ;;  %v1414_v21 = vld [vmem:[#allocation4 + $0x178] sm:$0xff]  }
 0x184   :  { %v379_v26 = vadd.f32 %v345_v18, %v181_v24  ;;  %v381_v27 = vadd.f32 %v353_v19, %v222_v25  ;;  %v183_v28 = vpop.f32.mrb[2].mxu0  ;;  %v224_v29 = vpop.f32.mrb[2].mxu1  ;;  %v1412_v17 = vld [vmem:[#allocation4 + $0x130] sm:$0xff]   ;;  %v357_v19 = vrot.slane %v1559_v13, %v356_v12  ;;  %v1417_v24 = vld [vmem:[#allocation4 + $0x1b8] sm:$0xff]   ;;  %v1450_v13 = vmov 0.0  }
 0x185   :  { %v184_v32 = vpop.f32.mrb[3].mxu0  ;;  %v225_v33 = vpop.f32.mrb[3].mxu1  ;;  %v386_v38 = vpack.c.bf16 %v378_v22, %v378_v22  ;;  %v388_v39 = vpack.c.bf16 %v380_v23, %v380_v23  ;;  %v1413_v18 = vld [vmem:[#allocation4 + $0x1b0] sm:$0xff]   ;;  %v1415_v22 = vld [vmem:[#allocation4 + $0x1f8] sm:$0xff]  }
 0x186   :  { %v387_v34 = vpack.c.bf16 %v379_v26, %v379_v26  ;;  %v389_v35 = vpack.c.bf16 %v381_v27, %v381_v27  ;;  %v1416_v23 = vld [vmem:[#allocation4 + $0x138] sm:$0xff]  }
 0x188   :  { %945 = vmatprep.mubr.bf16.mxu0 %v387_v34  ;;  %985 = vmatprep.mubr.bf16.mxu1 %v389_v35 }
 0x189   :  { %946 = vmatmul.mubr.bf16.vlgmr.msra.gmra.mrb[8].mxu0 %v386_v38  ;;  %986 = vmatmul.mubr.bf16.vlgmr.msra.gmra.mrb[8].mxu1 %v388_v39 }
 0x18a   :  { %1290 = vmatpush3.bf16.msra.mxu0 %v1388_v36  ;;  %1312 = vmatpush3.bf16.msra.mxu1 %v1389_v37  ;;  %v1573_v44 = vpop.f32.mrb[4].mxu0  ;;  %v1575_v45 = vpop.f32.mrb[4].mxu1 }
 0x18b   :  { %v263_v48 = vpop.f32.mrb[5].mxu0  ;;  %v304_v49 = vpop.f32.mrb[5].mxu1  ;;  %1291 = vmatprep.subr.bf16.mxu0 %v1390_v40  ;;  %1313 = vmatprep.subr.bf16.mxu1 %v1391_v41  ;;  %v382_v25 = vadd.f32 %v357_v19, %v1573_v44  ;;  %v384_v26 = vadd.f32 %v365_v20, %v1575_v45 }
 0x18c   :  { %v383_v52 = vadd.f32 %v361_v42, %v263_v48  ;;  %v385_v53 = vadd.f32 %v369_v43, %v304_v49  ;;  %v265_v54 = vpop.f32.mrb[6].mxu0  ;;  %v306_v55 = vpop.f32.mrb[6].mxu1 }
 0x18d   :  { %v266_v56 = vpop.f32.mrb[7].mxu0  ;;  %v307_v57 = vpop.f32.mrb[7].mxu1  ;;  %v390_v27 = vpack.c.bf16 %v382_v25, %v382_v25  ;;  %v392_v28 = vpack.c.bf16 %v384_v26, %v384_v26  ;;  %v1074_v55 = vld [vmem:[%s1603_s5] sm:$0x1] }
 0x18e   :  { %v391_v58 = vpack.c.bf16 %v383_v52, %v383_v52  ;;  %v393_v59 = vpack.c.bf16 %v385_v53, %v385_v53  ;;  %1292 = vmatpush3.bf16.msra.mxu0 %v1392_v46  ;;  %1314 = vmatpush3.bf16.msra.mxu1 %v1393_v47  ;;  %v1076_v56 = vstv %s1604_s6 }
 0x18f   :  { %1293 = vmatprep.subr.bf16.mxu0 %v1394_v50  ;;  %1315 = vmatprep.subr.bf16.mxu1 %v1395_v51 }
 0x190   :  { %1025 = vmatprep.mubr.bf16.mxu0 %v391_v58  ;;  %1065 = vmatprep.mubr.bf16.mxu1 %v393_v59 }
 0x192   :  { %1294 = vmatpush3.bf16.msra.mxu0 %v1396_v60  ;;  %1316 = vmatpush3.bf16.msra.mxu1 %v1397_v61 }
 0x193   :  { %1295 = vmatprep.subr.bf16.mxu0 %v1398_v62  ;;  %1317 = vmatprep.subr.bf16.mxu1 %v1399_v63 }
 0x196   :  { %1296 = vmatpush3.bf16.msra.mxu0 %v1400_v0  ;;  %1318 = vmatpush3.bf16.msra.mxu1 %v1401_v1 }
 0x197   :  { %1297 = vmatprep.subr.bf16.mxu0 %v1402_v2  ;;  %1319 = vmatprep.subr.bf16.mxu1 %v1403_v3 }
 0x19a   :  { %1298 = vmatpush3.bf16.msra.mxu0 %v1404_v4  ;;  %1320 = vmatpush3.bf16.msra.mxu1 %v1405_v5 }
 0x19b   :  { %1299 = vmatprep.subr.bf16.mxu0 %v1406_v6  ;;  %1321 = vmatprep.subr.bf16.mxu1 %v1407_v7 }
 0x19e   :  { %1300 = vmatpush3.bf16.msra.mxu0 %v1408_v8  ;;  %1322 = vmatpush3.bf16.msra.mxu1 %v1409_v9 }
 0x19f   :  { %1301 = vmatprep.subr.bf16.mxu0 %v1410_v15  ;;  %1323 = vmatprep.subr.bf16.mxu1 %v1411_v16 }
 0x1a2   :  { %1302 = vmatpush3.bf16.msra.mxu0 %v1412_v17  ;;  %1324 = vmatpush3.bf16.msra.mxu1 %v1413_v18 }
 0x1a3   :  { %1303 = vmatprep.subr.bf16.mxu0 %v1414_v21  ;;  %1325 = vmatprep.subr.bf16.mxu1 %v1415_v22 }
 0x1a6   :  { %1304 = vmatpush3.bf16.msra.mxu0 %v1416_v23  ;;  %1326 = vmatpush3.bf16.msra.mxu1 %v1417_v24 }
 0x1a7   :  { %1335 = vmatprep.subr.mxu0 %v1450_v13 }
 0x1a9   :  { %1026 = vmatmul.mubr.bf16.vlgmr.msra.gmra.mrb[12].mxu0 %v390_v27  ;;  %1066 = vmatmul.mubr.bf16.vlgmr.msra.gmra.mrb[12].mxu1 %v392_v28 }
 0x1aa   :  { %1337 = vmatprep.mubr.msk.f32.mxu0 %vm1451_vm6, %v1450_v13 }
 0x25c   :  { %v1261_v29 = vpop.f32.mrb[8].mxu0  ;;  %v1283_v30 = vpop.f32.mrb[8].mxu1 }
 0x25d   :  { %v1262_v32 = vpop.f32.mrb[9].mxu0  ;;  %v1284_v33 = vpop.f32.mrb[9].mxu1 }
 0x25e   :  { %v1263_v34 = vadd.f32 %v1262_v32, %v1261_v29  ;;  %v1285_v35 = vadd.f32 %v1284_v33, %v1283_v30  ;;  %v1264_v36 = vpop.f32.mrb[10].mxu0  ;;  %v1286_v37 = vpop.f32.mrb[10].mxu1 }
 0x25f   :  { %v1265_v38 = vpop.f32.mrb[11].mxu0  ;;  %v1287_v39 = vpop.f32.mrb[11].mxu1 }
 0x260   :  { %v948_v40 = vadd.f32 %v1263_v34, %v1179_v31 }
 0x262   :  { %v988_v41 = vadd.f32 %v1285_v35, %v948_v40 }
 0x27c   :  { %v1305_v42 = vpop.f32.mrb[12].mxu0  ;;  %v1327_v43 = vpop.f32.mrb[12].mxu1 }
 0x27d   :  { %v1306_v44 = vpop.f32.mrb[13].mxu0  ;;  %v1328_v45 = vpop.f32.mrb[13].mxu1 }
 0x27e   :  { %v1307_v46 = vadd.f32 %v1306_v44, %v1305_v42  ;;  %v1329_v47 = vadd.f32 %v1328_v45, %v1327_v43  ;;  %v1308_v48 = vpop.f32.mrb[14].mxu0  ;;  %v1330_v49 = vpop.f32.mrb[14].mxu1 }
 0x27f   :  { %v1309_v50 = vpop.f32.mrb[15].mxu0  ;;  %v1331_v51 = vpop.f32.mrb[15].mxu1 }
 0x280   :  { %v1028_v52 = vadd.f32 %v1307_v46, %v988_v41 }
 0x282   :  { %v1068_v53 = vadd.f32 %v1329_v47, %v1028_v52 }
 0x284   :  { %v1073_v54 = vmax.f32 %v1068_v53, 0.0 }
 0x286   :  { %1336 = vmatpush3.xpose.msra.mxu0 %v1073_v54 }
 0x289   :  { %1338 = vmatmul.mubr.f32.vlgmr.msra.gmra.mrb[16].mxu0 %v1074_v55 }
 0x35c   :  { %v1143_v57 = vpop.f32.mrb[16].mxu0 }
 0x35d   :  { %v1144_v58 = vadd.f32 %v1143_v57, %v1076_v56  ;;  %v1339_v59 = vpop.f32.mrb[17].mxu0 }
 0x35f   :  { %v1244_v60 = vmul.f32 -1.442695, %v1144_v58 }
 0x361   :  { %1418 = vpow2.f32 %v1244_v60 }
 0x36b   :  { %v1419_v61 = vpop.eup %1418 }
 0x36c   :  { %v1150_v62 = vadd.f32 1.0, %v1419_v61 }
 0x36e   :  { %1420 = vrcp.f32 %v1150_v62 }
 0x378   :  { %v1421_v63 = vpop.eup %1420 }
 0x379   :  { %v1156_v0 = vrot.slane %v1421_v63, %v340_v11 }
 0x37b   :  { %1157 = vst.msk [vmem:[%s1605_s7] sm:$0xff] %vm116_vm5, %v1156_v0 }
 0x37c   :  { %1162 = vsyncpa [#allocation5], 1 }

</bundles_post_ra>
